<compile_context>
chip_gen: v7x
topology: tpu7x:2x2x1
jax: 0.10.0
libtpu: 0.0.40
codegen_flags: <defaults>
</compile_context>

<pallas_src>
import math

import jax
import jax.numpy as jnp
from jax.experimental import pallas as pl
from jax.experimental.pallas import tpu as pltpu


def _round_up(x, m):
    return (x + m - 1) // m * m


def _cdiv(a, b):
    return (a + b - 1) // b


# Layer-1 goes to the VPU (unrolled FMA) when the contraction dim is this small.
_VPU_LAYER1_MAX_S = 16


def value_net_kernel(x_ref, w1_ref, b1_ref, w2_ref, b2_ref, w3_ref, b3_ref, o_ref):
    S = x_ref.shape[-1]

    if S <= _VPU_LAYER1_MAX_S:
        # K is tiny: a K=S matmul still costs a full MXU systolic pass (K padded
        # to 128/256), so do layer 1 on the (otherwise idle) VPU in f32.
        xf = x_ref[...].astype(jnp.float32)                # (TB, S) f32
        w1f = w1_ref[...].astype(jnp.float32)              # (S, H)  f32, tiny
        acc = xf[:, 0:1] * w1f[0:1, :]
        for k in range(1, S):                              # static unroll (S small)
            acc = acc + xf[:, k:k + 1] * w1f[k:k + 1, :]
        # Fused bias + ReLU + bf16 cast: the f32 intermediate dies immediately.
        h1 = jnp.maximum(acc + b1_ref[...], 0.0).astype(w2_ref.dtype)
    else:
        xb = x_ref[...].astype(w1_ref.dtype)
        h1 = jnp.maximum(
            jnp.dot(xb, w1_ref[...], preferred_element_type=jnp.float32) + b1_ref[...],
            0.0).astype(w2_ref.dtype)

    # Dominant HxH layer on the MXU, f32 accumulation, fused bias + ReLU.
    h2 = jnp.maximum(
        jnp.dot(h1, w2_ref[...], preferred_element_type=jnp.float32) + b2_ref[...],
        0.0)                                               # (TB, H) f32

    # Final (H, 1) layer: VPU broadcast-mul + XLU lane reduce (no N=1 MXU pass);
    # scalar b3 from SMEM; store as a lane-dense (1, TB) row slab.
    v = jnp.sum(h2 * w3_ref[...], axis=-1) + b3_ref[0]     # (TB,)
    o_ref[...] = v[None, :].astype(o_ref.dtype)


# ----------------------------- sizing helpers -----------------------------------
def _tpu_vmem_capacity_bytes():
    try:
        return int(pltpu.get_tpu_info().vmem_capacity_bytes)
    except Exception:
        return 64 * 2**20        # conservative default (v7x per-TC VMEM)


def _generation_budget():
    cap = _tpu_vmem_capacity_bytes()
    if cap >= 96 * 2**20:        # v5e / v6e: 128 MiB physical VMEM
        return 72 * 2**20, 96 * 2**20, 2048      # budget, vmem_limit, tile_b_max
    # v7x: 64 MiB physical per TensorCore
    return 36 * 2**20, 48 * 2**20, 1024


def _vmem_need_bytes(tile_b, S, H, weight_bytes):
    stream = 2 * tile_b * (S * 4 + 4)            # double-buffered state tile + out row
    inter = tile_b * H * 12                      # h1/h2 f32 + bf16 copies (scratch/spill)
    return stream + inter + weight_bytes         # weights assumed single-buffered


def _choose_tile_b(B, S, H, weight_bytes, budget, tile_b_max):
    if B <= 128:
        # Single grid step; output block == full padded batch (lane constraint ok).
        return max(8, _round_up(B, 8))
    # Lane-dense 128-row multiples; >= 2 steps so both v7x TCs get work.
    tile_b = min(tile_b_max, _round_up(_cdiv(B, 2), 128))
    while tile_b > 128 and _vmem_need_bytes(tile_b, S, H, weight_bytes) > budget:
        tile_b -= 128
    return tile_b


def _build_call(b_pad, tile_b, S, H, vmem_limit, single_buffer_weights):
    def const_spec(shape):
        idx = lambda i: (0,) * len(shape)
        if single_buffer_weights:
            # Constant index_map => never re-fetched; 1 buffer halves VMEM use.
            return pl.BlockSpec(shape, idx, pipeline_mode=pl.Buffered(buffer_count=1))
        return pl.BlockSpec(shape, idx)

    return pl.pallas_call(
        value_net_kernel,
        out_shape=jax.ShapeDtypeStruct((1, b_pad), jnp.float32),
        grid=(b_pad // tile_b,),
        in_specs=[
            pl.BlockSpec((tile_b, S), lambda i: (i, 0)),        # streamed state tile
            const_spec((S, H)),                                 # w1 (VMEM-resident)
            const_spec((1, H)),                                 # b1
            const_spec((H, H)),                                 # w2
            const_spec((1, H)),                                 # b2
            const_spec((1, H)),                                 # w3 row
            pl.BlockSpec(memory_space=pltpu.MemorySpace.SMEM),  # b3 scalar
        ],
        out_specs=pl.BlockSpec((1, tile_b), lambda i: (0, i)),  # lane-dense output rows
        compiler_params=pltpu.CompilerParams(
            dimension_semantics=("parallel",),
            vmem_limit_bytes=vmem_limit,
        ),
    )


def value_network_forward(state, params):
    """state: (B, state_dim) f32.  params: packed dict from pack_params()."""
    B, S = state.shape
    w1, b1, w2, b2, w3, b3 = (params[k] for k in ("w1", "b1", "w2", "b2", "w3", "b3"))
    H = w1.shape[1]

    weight_bytes = sum(int(a.size) * a.dtype.itemsize for a in (w1, b1, w2, b2, w3))
    budget, vmem_limit, tile_b_max = _generation_budget()
    tile_b = _choose_tile_b(B, S, H, weight_bytes, budget, tile_b_max)

    b_pad = _round_up(B, tile_b)
    if b_pad != B:
        state = jnp.pad(state, ((0, b_pad - B), (0, 0)))

    call_args = (state, w1, b1, w2, b2, w3, b3)
    try:
        out = _build_call(b_pad, tile_b, S, H, vmem_limit, True)(*call_args)
    except Exception:
        # This JAX build rejected pipeline_mode=pl.Buffered(1); fall back to the
        # default (double-buffered) resident weights -- identical semantics.
        out = _build_call(b_pad, tile_b, S, H, vmem_limit, False)(*call_args)

    return out.reshape(b_pad, 1)[:B]


# ----------------------------- parameters ---------------------------------------
def init_master_params(key, state_dim, hidden_dim, init_w=0.003):
    """f32 master weights, stored transposed to (in, out); matches PyTorch init."""
    k1, k2, k3, k4, k5, k6 = jax.random.split(key, 6)
    bd1 = 1.0 / math.sqrt(state_dim)
    bd2 = 1.0 / math.sqrt(hidden_dim)
    return {
        "w1": jax.random.uniform(k1, (state_dim, hidden_dim), jnp.float32, -bd1, bd1),
        "b1": jax.random.uniform(k2, (hidden_dim,), jnp.float32, -bd1, bd1),
        "w2": jax.random.uniform(k3, (hidden_dim, hidden_dim), jnp.float32, -bd2, bd2),
        "b2": jax.random.uniform(k4, (hidden_dim,), jnp.float32, -bd2, bd2),
        "w3": jax.random.uniform(k5, (hidden_dim, 1), jnp.float32, -init_w, init_w),
        "b3": jax.random.uniform(k6, (1,), jnp.float32, -init_w, init_w),
    }


def pack_params(master, compute_dtype=jnp.bfloat16, lane_multiple=128):
    """Zero-pad hidden to a lane multiple; matmul weights in bf16, rest f32."""
    hd = master["w1"].shape[1]
    h_pad = _round_up(hd, lane_multiple)
    p = h_pad - hd
    return {
        "w1": jnp.pad(master["w1"], ((0, 0), (0, p))).astype(compute_dtype),
        "b1": jnp.pad(master["b1"], (0, p)).reshape(1, h_pad).astype(jnp.float32),
        "w2": jnp.pad(master["w2"], ((0, p), (0, p))).astype(compute_dtype),
        "b2": jnp.pad(master["b2"], (0, p)).reshape(1, h_pad).astype(jnp.float32),
        "w3": jnp.pad(master["w3"][:, 0], (0, p)).reshape(1, h_pad).astype(jnp.float32),
        "b3": master["b3"].astype(jnp.float32),     # (1,), lives in SMEM
    }


# ----------------------------- references ---------------------------------------
def reference_f32(state, master):
    """Pure f32 reference == the PyTorch module's forward."""
    h1 = jnp.maximum(state @ master["w1"] + master["b1"], 0.0)
    h2 = jnp.maximum(h1 @ master["w2"] + master["b2"], 0.0)
    return h2 @ master["w3"] + master["b3"]


def reference_matched(state, params):
    """Mirrors the kernel's per-layer precision choices."""
    S = state.shape[-1]
    if S <= _VPU_LAYER1_MAX_S:
        w1f = params["w1"].astype(jnp.float32)
        h1 = jnp.maximum(state @ w1f + params["b1"], 0.0).astype(params["w2"].dtype)
    else:
        x = state.astype(params["w1"].dtype)
        h1 = jnp.maximum(
            jnp.dot(x, params["w1"], preferred_element_type=jnp.float32) + params["b1"],
            0.0).astype(params["w2"].dtype)
    h2 = jnp.maximum(
        jnp.dot(h1, params["w2"], preferred_element_type=jnp.float32) + params["b2"],
        0.0)
    return jnp.sum(h2 * params["w3"], axis=-1, keepdims=True) + params["b3"]


if __name__ == "__main__":
    key = jax.random.PRNGKey(0)
    k_params, k_state = jax.random.split(key)

    batch, state_dim, hidden_dim = 2, 4, 32
    master = init_master_params(k_params, state_dim, hidden_dim)
    params = pack_params(master)
    state = jax.random.normal(k_state, (batch, state_dim), dtype=jnp.float32)

    out = jax.block_until_ready(value_network_forward(state, params))

    assert out.shape == (batch, 1), out.shape
    ref_m = reference_matched(state, params)
    ref_f = reference_f32(state, master)
    assert bool(jnp.allclose(out, ref_m, atol=1e-4, rtol=1e-4)), (out, ref_m)
    assert bool(jnp.allclose(out, ref_f, atol=5e-3, rtol=5e-2)), (out, ref_f)

    print("KERNEL_OK")
</pallas_src>

<mosaic_0001>
module attributes {stable_mosaic.version = 11 : i64} {
  func.func @value_net_kernel(%arg0: i32, %arg1: memref<8x4xf32, #tpu.memory_space<vmem>>, %arg2: memref<4x128xbf16, #tpu.memory_space<vmem>>, %arg3: memref<1x128xf32, #tpu.memory_space<vmem>>, %arg4: memref<128x128xbf16, #tpu.memory_space<vmem>>, %arg5: memref<1x128xf32, #tpu.memory_space<vmem>>, %arg6: memref<1x128xf32, #tpu.memory_space<vmem>>, %arg7: memref<1xf32, #tpu.memory_space<smem>>, %arg8: memref<1x8xf32, #tpu.memory_space<vmem>>) attributes {dimension_semantics = [#tpu.dimension_semantics<parallel>], iteration_bounds = array<i64: 1>, scalar_prefetch = 0 : i64, scratch_operands = 0 : i64, tpu.core_type = #tpu.core_type<tc>, window_params = [{transform_indices = @transform_0, window_bounds = array<i64: 8, 4>}, {pipeline_mode = #tpu.pipeline_mode<synchronous>, transform_indices = @transform_1, window_bounds = array<i64: 4, 128>}, {pipeline_mode = #tpu.pipeline_mode<synchronous>, transform_indices = @transform_2, window_bounds = array<i64: 1, 128>}, {pipeline_mode = #tpu.pipeline_mode<synchronous>, transform_indices = @transform_3, window_bounds = array<i64: 128, 128>}, {pipeline_mode = #tpu.pipeline_mode<synchronous>, transform_indices = @transform_4, window_bounds = array<i64: 1, 128>}, {pipeline_mode = #tpu.pipeline_mode<synchronous>, transform_indices = @transform_5, window_bounds = array<i64: 1, 128>}, {transform_indices = @transform_6, window_bounds = array<i64: 1>}, {transform_indices = @transform_7, window_bounds = array<i64: 1, 8>}]} {
    %c0 = arith.constant 0 : index
    %c0_0 = arith.constant 0 : index
    %0 = vector.load %arg1[%c0, %c0_0] : memref<8x4xf32, #tpu.memory_space<vmem>>, vector<8x4xf32>
    %c0_1 = arith.constant 0 : index
    %c0_2 = arith.constant 0 : index
    %1 = vector.load %arg2[%c0_1, %c0_2] : memref<4x128xbf16, #tpu.memory_space<vmem>>, vector<4x128xbf16>
    %2 = arith.extf %1 : vector<4x128xbf16> to vector<4x128xf32>
    %3 = vector.extract_strided_slice %0 {offsets = [0, 0], sizes = [8, 1], strides = [1, 1]} : vector<8x4xf32> to vector<8x1xf32>
    %4 = vector.extract_strided_slice %2 {offsets = [0, 0], sizes = [1, 128], strides = [1, 1]} : vector<4x128xf32> to vector<1x128xf32>
    %5 = vector.broadcast %3 : vector<8x1xf32> to vector<8x128xf32>
    %6 = vector.broadcast %4 : vector<1x128xf32> to vector<8x128xf32>
    %7 = arith.mulf %5, %6 : vector<8x128xf32>
    %8 = vector.extract_strided_slice %0 {offsets = [0, 1], sizes = [8, 1], strides = [1, 1]} : vector<8x4xf32> to vector<8x1xf32>
    %9 = vector.extract_strided_slice %2 {offsets = [1, 0], sizes = [1, 128], strides = [1, 1]} : vector<4x128xf32> to vector<1x128xf32>
    %10 = vector.broadcast %8 : vector<8x1xf32> to vector<8x128xf32>
    %11 = vector.broadcast %9 : vector<1x128xf32> to vector<8x128xf32>
    %12 = arith.mulf %10, %11 : vector<8x128xf32>
    %13 = arith.addf %7, %12 : vector<8x128xf32>
    %14 = vector.extract_strided_slice %0 {offsets = [0, 2], sizes = [8, 1], strides = [1, 1]} : vector<8x4xf32> to vector<8x1xf32>
    %15 = vector.extract_strided_slice %2 {offsets = [2, 0], sizes = [1, 128], strides = [1, 1]} : vector<4x128xf32> to vector<1x128xf32>
    %16 = vector.broadcast %14 : vector<8x1xf32> to vector<8x128xf32>
    %17 = vector.broadcast %15 : vector<1x128xf32> to vector<8x128xf32>
    %18 = arith.mulf %16, %17 : vector<8x128xf32>
    %19 = arith.addf %13, %18 : vector<8x128xf32>
    %20 = vector.extract_strided_slice %0 {offsets = [0, 3], sizes = [8, 1], strides = [1, 1]} : vector<8x4xf32> to vector<8x1xf32>
    %21 = vector.extract_strided_slice %2 {offsets = [3, 0], sizes = [1, 128], strides = [1, 1]} : vector<4x128xf32> to vector<1x128xf32>
    %22 = vector.broadcast %20 : vector<8x1xf32> to vector<8x128xf32>
    %23 = vector.broadcast %21 : vector<1x128xf32> to vector<8x128xf32>
    %24 = arith.mulf %22, %23 : vector<8x128xf32>
    %25 = arith.addf %19, %24 : vector<8x128xf32>
    %c0_3 = arith.constant 0 : index
    %c0_4 = arith.constant 0 : index
    %26 = vector.load %arg3[%c0_3, %c0_4] : memref<1x128xf32, #tpu.memory_space<vmem>>, vector<1x128xf32>
    %27 = vector.broadcast %26 : vector<1x128xf32> to vector<8x128xf32>
    %28 = arith.addf %25, %27 : vector<8x128xf32>
    %cst = arith.constant 0.000000e+00 : f32
    %29 = vector.broadcast %cst : f32 to vector<8x128xf32>
    %30 = arith.maximumf %28, %29 : vector<8x128xf32>
    %31 = arith.truncf %30 : vector<8x128xf32> to vector<8x128xbf16>
    %c0_5 = arith.constant 0 : index
    %c0_6 = arith.constant 0 : index
    %32 = vector.load %arg4[%c0_5, %c0_6] : memref<128x128xbf16, #tpu.memory_space<vmem>>, vector<128x128xbf16>
    %cst_7 = arith.constant dense<0.000000e+00> : vector<8x128xf32>
    %33 = tpu.matmul %31, %32, %cst_7 {dimension_numbers = #tpu.dot_dimension_numbers<[1], [0], [0], [1], [0, 0, 1, 1], [], []>} : vector<8x128xbf16>, vector<128x128xbf16>, vector<8x128xf32> -> vector<8x128xf32>
    %c0_8 = arith.constant 0 : index
    %c0_9 = arith.constant 0 : index
    %34 = vector.load %arg5[%c0_8, %c0_9] : memref<1x128xf32, #tpu.memory_space<vmem>>, vector<1x128xf32>
    %35 = vector.broadcast %34 : vector<1x128xf32> to vector<8x128xf32>
    %36 = arith.addf %33, %35 : vector<8x128xf32>
    %cst_10 = arith.constant 0.000000e+00 : f32
    %37 = vector.broadcast %cst_10 : f32 to vector<8x128xf32>
    %38 = arith.maximumf %36, %37 : vector<8x128xf32>
    %c0_11 = arith.constant 0 : index
    %c0_12 = arith.constant 0 : index
    %39 = vector.load %arg6[%c0_11, %c0_12] : memref<1x128xf32, #tpu.memory_space<vmem>>, vector<1x128xf32>
    %40 = vector.broadcast %39 : vector<1x128xf32> to vector<8x128xf32>
    %41 = arith.mulf %38, %40 : vector<8x128xf32>
    %cst_13 = arith.constant dense<0.000000e+00> : vector<8xf32>
    %42 = vector.multi_reduction <add>, %41, %cst_13 [1] : vector<8x128xf32> to vector<8xf32>
    %c0_14 = arith.constant 0 : index
    %43 = memref.load %arg7[%c0_14] : memref<1xf32, #tpu.memory_space<smem>>
    %44 = vector.broadcast %43 : f32 to vector<8xf32>
    %45 = arith.addf %42, %44 : vector<8xf32>
    %46 = vector.shape_cast %45 : vector<8xf32> to vector<1x8xf32>
    %c0_15 = arith.constant 0 : index
    %c0_16 = arith.constant 0 : index
    %47 = vector.load %arg8[%c0_15, %c0_16] : memref<1x8xf32, #tpu.memory_space<vmem>>, vector<1x8xf32>
    tpu.vector_store %arg8[%c0_15, %c0_16], %46 {strides = array<i32>} : memref<1x8xf32, #tpu.memory_space<vmem>>, vector<1x8xf32>,
    return
  }
  func.func @transform_0(%arg0: i32) -> (i32, i32) {
    %c0_i32 = arith.constant 0 : i32
    %c0_i32_0 = arith.constant 0 : i32
    return %arg0, %c0_i32 : i32, i32
  }
  func.func @transform_1(%arg0: i32) -> (i32, i32) {
    %c0_i32 = arith.constant 0 : i32
    %c0_i32_0 = arith.constant 0 : i32
    %c0_i32_1 = arith.constant 0 : i32
    return %c0_i32, %c0_i32_0 : i32, i32
  }
  func.func @transform_2(%arg0: i32) -> (i32, i32) {
    %c0_i32 = arith.constant 0 : i32
    %c0_i32_0 = arith.constant 0 : i32
    %c0_i32_1 = arith.constant 0 : i32
    return %c0_i32, %c0_i32_0 : i32, i32
  }
  func.func @transform_3(%arg0: i32) -> (i32, i32) {
    %c0_i32 = arith.constant 0 : i32
    %c0_i32_0 = arith.constant 0 : i32
    %c0_i32_1 = arith.constant 0 : i32
    return %c0_i32, %c0_i32_0 : i32, i32
  }
  func.func @transform_4(%arg0: i32) -> (i32, i32) {
    %c0_i32 = arith.constant 0 : i32
    %c0_i32_0 = arith.constant 0 : i32
    %c0_i32_1 = arith.constant 0 : i32
    return %c0_i32, %c0_i32_0 : i32, i32
  }
  func.func @transform_5(%arg0: i32) -> (i32, i32) {
    %c0_i32 = arith.constant 0 : i32
    %c0_i32_0 = arith.constant 0 : i32
    %c0_i32_1 = arith.constant 0 : i32
    return %c0_i32, %c0_i32_0 : i32, i32
  }
  func.func @transform_6(%arg0: i32) -> i32 {
    %c0_i32 = arith.constant 0 : i32
    %c0_i32_0 = arith.constant 0 : i32
    return %c0_i32 : i32
  }
  func.func @transform_7(%arg0: i32) -> (i32, i32) {
    %c0_i32 = arith.constant 0 : i32
    %c0_i32_0 = arith.constant 0 : i32
    return %c0_i32, %arg0 : i32, i32
  }
}

module attributes {stable_mosaic.version = 11 : i64} {
  func.func @value_net_kernel(%arg0: i32, %arg1: memref<8x4xf32, #tpu.memory_space<vmem>>, %arg2: memref<4x128xbf16, #tpu.memory_space<vmem>>, %arg3: memref<1x128xf32, #tpu.memory_space<vmem>>, %arg4: memref<128x128xbf16, #tpu.memory_space<vmem>>, %arg5: memref<1x128xf32, #tpu.memory_space<vmem>>, %arg6: memref<1x128xf32, #tpu.memory_space<vmem>>, %arg7: memref<1xf32, #tpu.memory_space<smem>>, %arg8: memref<1x8xf32, #tpu.memory_space<vmem>>) attributes {dimension_semantics = [#tpu.dimension_semantics<parallel>], iteration_bounds = array<i64: 1>, scalar_prefetch = 0 : i64, scratch_operands = 0 : i64, tpu.core_type = #tpu.core_type<tc>, window_params = [{transform_indices = @transform_0, window_bounds = array<i64: 8, 4>}, {pipeline_mode = #tpu.pipeline_mode<synchronous>, transform_indices = @transform_1, window_bounds = array<i64: 4, 128>}, {pipeline_mode = #tpu.pipeline_mode<synchronous>, transform_indices = @transform_2, window_bounds = array<i64: 1, 128>}, {pipeline_mode = #tpu.pipeline_mode<synchronous>, transform_indices = @transform_3, window_bounds = array<i64: 128, 128>}, {pipeline_mode = #tpu.pipeline_mode<synchronous>, transform_indices = @transform_4, window_bounds = array<i64: 1, 128>}, {pipeline_mode = #tpu.pipeline_mode<synchronous>, transform_indices = @transform_5, window_bounds = array<i64: 1, 128>}, {transform_indices = @transform_6, window_bounds = array<i64: 1>}, {transform_indices = @transform_7, window_bounds = array<i64: 1, 8>}]} {
    %c0 = arith.constant 0 : index
    %c0_0 = arith.constant 0 : index
    %0 = vector.load %arg1[%c0, %c0_0] : memref<8x4xf32, #tpu.memory_space<vmem>>, vector<8x4xf32>
    %c0_1 = arith.constant 0 : index
    %c0_2 = arith.constant 0 : index
    %1 = vector.load %arg2[%c0_1, %c0_2] : memref<4x128xbf16, #tpu.memory_space<vmem>>, vector<4x128xbf16>
    %2 = arith.extf %1 : vector<4x128xbf16> to vector<4x128xf32>
    %3 = vector.extract_strided_slice %0 {offsets = [0, 0], sizes = [8, 1], strides = [1, 1]} : vector<8x4xf32> to vector<8x1xf32>
    %4 = vector.extract_strided_slice %2 {offsets = [0, 0], sizes = [1, 128], strides = [1, 1]} : vector<4x128xf32> to vector<1x128xf32>
    %5 = vector.broadcast %3 : vector<8x1xf32> to vector<8x128xf32>
    %6 = vector.broadcast %4 : vector<1x128xf32> to vector<8x128xf32>
    %7 = arith.mulf %5, %6 : vector<8x128xf32>
    %8 = vector.extract_strided_slice %0 {offsets = [0, 1], sizes = [8, 1], strides = [1, 1]} : vector<8x4xf32> to vector<8x1xf32>
    %9 = vector.extract_strided_slice %2 {offsets = [1, 0], sizes = [1, 128], strides = [1, 1]} : vector<4x128xf32> to vector<1x128xf32>
    %10 = vector.broadcast %8 : vector<8x1xf32> to vector<8x128xf32>
    %11 = vector.broadcast %9 : vector<1x128xf32> to vector<8x128xf32>
    %12 = arith.mulf %10, %11 : vector<8x128xf32>
    %13 = arith.addf %7, %12 : vector<8x128xf32>
    %14 = vector.extract_strided_slice %0 {offsets = [0, 2], sizes = [8, 1], strides = [1, 1]} : vector<8x4xf32> to vector<8x1xf32>
    %15 = vector.extract_strided_slice %2 {offsets = [2, 0], sizes = [1, 128], strides = [1, 1]} : vector<4x128xf32> to vector<1x128xf32>
    %16 = vector.broadcast %14 : vector<8x1xf32> to vector<8x128xf32>
    %17 = vector.broadcast %15 : vector<1x128xf32> to vector<8x128xf32>
    %18 = arith.mulf %16, %17 : vector<8x128xf32>
    %19 = arith.addf %13, %18 : vector<8x128xf32>
    %20 = vector.extract_strided_slice %0 {offsets = [0, 3], sizes = [8, 1], strides = [1, 1]} : vector<8x4xf32> to vector<8x1xf32>
    %21 = vector.extract_strided_slice %2 {offsets = [3, 0], sizes = [1, 128], strides = [1, 1]} : vector<4x128xf32> to vector<1x128xf32>
    %22 = vector.broadcast %20 : vector<8x1xf32> to vector<8x128xf32>
    %23 = vector.broadcast %21 : vector<1x128xf32> to vector<8x128xf32>
    %24 = arith.mulf %22, %23 : vector<8x128xf32>
    %25 = arith.addf %19, %24 : vector<8x128xf32>
    %c0_3 = arith.constant 0 : index
    %c0_4 = arith.constant 0 : index
    %26 = vector.load %arg3[%c0_3, %c0_4] : memref<1x128xf32, #tpu.memory_space<vmem>>, vector<1x128xf32>
    %27 = vector.broadcast %26 : vector<1x128xf32> to vector<8x128xf32>
    %28 = arith.addf %25, %27 : vector<8x128xf32>
    %cst = arith.constant 0.000000e+00 : f32
    %29 = vector.broadcast %cst : f32 to vector<8x128xf32>
    %30 = arith.maximumf %28, %29 : vector<8x128xf32>
    %31 = arith.truncf %30 : vector<8x128xf32> to vector<8x128xbf16>
    %c0_5 = arith.constant 0 : index
    %c0_6 = arith.constant 0 : index
    %32 = vector.load %arg4[%c0_5, %c0_6] : memref<128x128xbf16, #tpu.memory_space<vmem>>, vector<128x128xbf16>
    %cst_7 = arith.constant dense<0.000000e+00> : vector<8x128xf32>
    %33 = tpu.matmul %31, %32, %cst_7 {dimension_numbers = #tpu.dot_dimension_numbers<[1], [0], [0], [1], [0, 0, 1, 1], [], []>} : vector<8x128xbf16>, vector<128x128xbf16>, vector<8x128xf32> -> vector<8x128xf32>
    %c0_8 = arith.constant 0 : index
    %c0_9 = arith.constant 0 : index
    %34 = vector.load %arg5[%c0_8, %c0_9] : memref<1x128xf32, #tpu.memory_space<vmem>>, vector<1x128xf32>
    %35 = vector.broadcast %34 : vector<1x128xf32> to vector<8x128xf32>
    %36 = arith.addf %33, %35 : vector<8x128xf32>
    %cst_10 = arith.constant 0.000000e+00 : f32
    %37 = vector.broadcast %cst_10 : f32 to vector<8x128xf32>
    %38 = arith.maximumf %36, %37 : vector<8x128xf32>
    %c0_11 = arith.constant 0 : index
    %c0_12 = arith.constant 0 : index
    %39 = vector.load %arg6[%c0_11, %c0_12] : memref<1x128xf32, #tpu.memory_space<vmem>>, vector<1x128xf32>
    %40 = vector.broadcast %39 : vector<1x128xf32> to vector<8x128xf32>
    %41 = arith.mulf %38, %40 : vector<8x128xf32>
    %cst_13 = arith.constant dense<0.000000e+00> : vector<8xf32>
    %42 = vector.multi_reduction <add>, %41, %cst_13 [1] : vector<8x128xf32> to vector<8xf32>
    %c0_14 = arith.constant 0 : index
    %43 = memref.load %arg7[%c0_14] : memref<1xf32, #tpu.memory_space<smem>>
    %44 = vector.broadcast %43 : f32 to vector<8xf32>
    %45 = arith.addf %42, %44 : vector<8xf32>
    %46 = vector.shape_cast %45 : vector<8xf32> to vector<1x8xf32>
    %c0_15 = arith.constant 0 : index
    %c0_16 = arith.constant 0 : index
    %47 = vector.load %arg8[%c0_15, %c0_16] : memref<1x8xf32, #tpu.memory_space<vmem>>, vector<1x8xf32>
    tpu.vector_store %arg8[%c0_15, %c0_16], %46 {strides = array<i32>} : memref<1x8xf32, #tpu.memory_space<vmem>>, vector<1x8xf32>,
    return
  }
  func.func @transform_0(%arg0: i32) -> (i32, i32) {
    %c0_i32 = arith.constant 0 : i32
    %c0_i32_0 = arith.constant 0 : i32
    return %arg0, %c0_i32 : i32, i32
  }
  func.func @transform_1(%arg0: i32) -> (i32, i32) {
    %c0_i32 = arith.constant 0 : i32
    %c0_i32_0 = arith.constant 0 : i32
    %c0_i32_1 = arith.constant 0 : i32
    return %c0_i32, %c0_i32_0 : i32, i32
  }
  func.func @transform_2(%arg0: i32) -> (i32, i32) {
    %c0_i32 = arith.constant 0 : i32
    %c0_i32_0 = arith.constant 0 : i32
    %c0_i32_1 = arith.constant 0 : i32
    return %c0_i32, %c0_i32_0 : i32, i32
  }
  func.func @transform_3(%arg0: i32) -> (i32, i32) {
    %c0_i32 = arith.constant 0 : i32
    %c0_i32_0 = arith.constant 0 : i32
    %c0_i32_1 = arith.constant 0 : i32
    return %c0_i32, %c0_i32_0 : i32, i32
  }
  func.func @transform_4(%arg0: i32) -> (i32, i32) {
    %c0_i32 = arith.constant 0 : i32
    %c0_i32_0 = arith.constant 0 : i32
    %c0_i32_1 = arith.constant 0 : i32
    return %c0_i32, %c0_i32_0 : i32, i32
  }
  func.func @transform_5(%arg0: i32) -> (i32, i32) {
    %c0_i32 = arith.constant 0 : i32
    %c0_i32_0 = arith.constant 0 : i32
    %c0_i32_1 = arith.constant 0 : i32
    return %c0_i32, %c0_i32_0 : i32, i32
  }
  func.func @transform_6(%arg0: i32) -> i32 {
    %c0_i32 = arith.constant 0 : i32
    %c0_i32_0 = arith.constant 0 : i32
    return %c0_i32 : i32
  }
  func.func @transform_7(%arg0: i32) -> (i32, i32) {
    %c0_i32 = arith.constant 0 : i32
    %c0_i32_0 = arith.constant 0 : i32
    return %c0_i32, %arg0 : i32, i32
  }
}

</mosaic_0001>

<bundles_post_ra>
// kernel: tpu_custom_call.1
= control target key start
LH: loop header
LB: loop body
LE: loop exit
PB: predicated region body
PF: predicated region fallthrough
CT: control target
= control target key end

     0   :  { %13 = vsyncpa [#allocation4], 0  ;;  %s449_s0 = inlined_call_operand.vmem [shape: f32[8,4], index: 0, kind: input, shape index: {}]   ;;  %s450_s1 = inlined_call_operand.vmem [shape: bf16[4,128], index: 1, kind: input, shape index: {}]   ;;  %s451_s2 = inlined_call_operand.vmem [shape: f32[1,128], index: 2, kind: input, shape index: {}]   ;;  %s452_s3 = inlined_call_operand.hbm [shape: bf16[128,128], index: 3, kind: input, shape index: {}]   ;;  %s453_s4 = inlined_call_operand.vmem [shape: f32[1,128], index: 4, kind: input, shape index: {}]   ;;  %s454_s5 = inlined_call_operand.vmem [shape: f32[1,128], index: 5, kind: input, shape index: {}]   ;;  %s455_s6 = inlined_call_operand.<no memory space> [shape: f32[1], index: 6, kind: input, shape index: {}]   ;;  %s456_s7 = inlined_call_operand.hbm [shape: f32[1,8], index: 7, kind: output, shape index: {}]  }
   0x1   :  { %14 = vsyncpa [#allocation5], 0  ;;  %s357_s24 = smov [#allocation3]   ;;  %s309_s28 = scalar_lea.hbm %s452_s3, 1024 }
   0x2   :  { %s26_s25 = sshll.u32 %s357_s24, 4  ;;  %p310_p0 = scmp.ne.s32.totalorder %s452_s3, %s309_s28  ;;  %s27_s25 = int_to_ptr.vmem [resolvable:$true] %s26_s25 }
   0x3   :  { %p313_p1 = scmp.lt.u32.totalorder %s309_s28, %s452_s3 }
   0x5   :  { %p315_p2 = pnand %p313_p1, %p310_p0 }
   0x7   :  { %318 = shalt.err (!%p315_p2)
}
   0x8   :  { %s319_s10 = scalar_lea.vmem %s27_s25, 1024  ;;  %p324_p4 = scmp.lt.s32.totalorder %s27_s25, %s27_s25 }
   0x9   :  { %p320_p3 = scmp.ne.s32.totalorder %s27_s25, %s319_s10  ;;  %p325_p5 = scmp.lt.s32.totalorder %s319_s10, %s319_s10 }
   0xb   :  { %p326_p6 = por %p325_p5, %p324_p4 }
   0xd   :  { %p327_p7 = pnand %p326_p6, %p320_p3 }
   0xf   :  { %330 = shalt.err (!%p327_p7)
}
  0x10   :  { %s358_s11 = smov 64   ;;  %s359_s12 = smov 4  }
  0x11   :  { %32 = dma.hbm_to_vmem [thread:$0]  %s452_s3, 1024, %s27_s25, [#allocation4], %s358_s11, %s358_s11, %s359_s12  }
  0x12   :  { %353 = dma.done.wait [#allocation4], 1024  }
  0x13   :  { %354 = vsyncadd [#allocation4], 4294966272  ;;  %v360_v0 = vmov 0   ;;  %v361_v1 = vmov 2   ;;  %v362_v2 = vmov 0.0   ;;  %v43_v3 = vld [vmem:[%s449_s0] sm:$0xff]  ;;  %v51_v14 = vlaneseq }
  0x14   :  { %296 = vset.pattern.permute.xlu0 %v360_v0  ;;  %298 = vset.pattern.permute.xlu1 %v361_v1  ;;  %v301_v4 = vld [vmem:[#allocation3] sm:$0xff]   ;;  %v302_v5 = vld [vmem:[#allocation3 + $0x8] sm:$0xff]   ;;  %v363_v6 = vmov 1   ;;  %v364_v7 = vmov 3   ;;  %v303_v8 = vld [vmem:[#allocation3 + $0x10] sm:$0xff]   ;;  %vm365_vm0 = vmmov 0   ;;  %v219_v51 = vstv %s455_s6 }
  0x15   :  { %266 = vmatprep.subr.bf16.mxu0 %v362_v2  ;;  %48 = vperm.xlu0 %296, %v43_v3   ;;  %v304_v9 = vld [vmem:[#allocation3 + $0x18] sm:$0xff]   ;;  %v305_v10 = vld [vmem:[#allocation3 + $0x20] sm:$0xff]   ;;  %v306_v11 = vld [vmem:[#allocation3 + $0x28] sm:$0xff]   ;;  %v52_v15 = vshrl.u32 %v51_v14, 7  ;;  %v223_v50 = vand.u32 127, %v51_v14  ;;  %vm229_vm1 = vcmask 57344  }
  0x16   :  { %67 = vperm.xlu1 %298, %v43_v3   ;;  %267 = vmatpush3.bf16.msra.mxu0 %v301_v4  ;;  %v307_v12 = vld [vmem:[#allocation3 + $0x30] sm:$0xff]   ;;  %v308_v13 = vld [vmem:[#allocation3 + $0x38] sm:$0xff]   ;;  %v44_v16 = vld [vmem:[%s450_s1] sm:$0x3] }
  0x17   :  { %268 = vmatprep.subr.bf16.mxu0 %v362_v2  ;;  %282 = vmatprep.mubr.msk.bf16.mxu0 %vm365_vm0, %v362_v2  ;;  %v45_v17 = vunpack.c.l.bf16 %v44_v16  ;;  %v53_v18 = vsub.s32 0, %v52_v15  ;;  %v62_v19 = vsub.s32 1, %v52_v15  ;;  %v72_v21 = vsub.s32 2, %v52_v15  ;;  %v246_v36 = vld [vmem:[%s451_s2] ss:$0 sm:$0xff] }
  0x18   :  { %v82_v23 = vsub.s32 3, %v52_v15  ;;  %v247_v41 = vld [vmem:[%s453_s4] ss:$0 sm:$0xff]  ;;  %v226_v52 = vsub.s32 %v223_v50, %v52_v15  ;;  %s366_s4 = smov [#allocation6]  }
  0x19   :  { %297 = vset.pattern.permute.xlu0 %v363_v6  ;;  %v54_v24 = vrot.slane %v45_v17, %v53_v18  ;;  %v63_v25 = vrot.slane %v45_v17, %v62_v19  ;;  %v73_v26 = vrot.slane %v45_v17, %v72_v21  ;;  %v256_v46 = vld [vmem:[%s454_s5] ss:$0 sm:$0xff]  ;;  %s237_s23 = sshll.u32 %s366_s4, 4  ;;  %s238_s23 = int_to_ptr.vmem [resolvable:$true] %s237_s23 }
  0x1a   :  { %299 = vset.pattern.permute.xlu1 %v364_v7  ;;  %57 = vperm.xlu0 %297, %v43_v3   ;;  %v83_v27 = vrot.slane %v45_v17, %v82_v23  ;;  %s331_s24 = scalar_lea.vmem %s238_s23, 16  ;;  %s335_s5 = scalar_lea.vmem %s238_s23, 32 }
  0x1b   :  { %77 = vperm.xlu1 %299, %v43_v3   ;;  %269 = vmatpush3.bf16.msra.mxu0 %v302_v5  ;;  %p332_p8 = scmp.ne.s32.totalorder %s238_s23, %s331_s24  ;;  %p336_p9 = scmp.lt.s32.totalorder %s238_s23, %s238_s23 }
  0x1c   :  { %270 = vmatprep.subr.bf16.mxu0 %v362_v2  ;;  %p337_p10 = scmp.lt.s32.totalorder %s335_s5, %s331_s24 }
  0x1e   :  { %300 = vset.pattern.permute.xlu0 %v364_v7  ;;  %p338_p11 = por %p337_p10, %p336_p9 }
  0x1f   :  { %271 = vmatpush3.bf16.msra.mxu0 %v303_v8 }
  0x20   :  { %272 = vmatprep.subr.bf16.mxu0 %v362_v2  ;;  %p339_p12 = pnand %p338_p11, %p332_p8 }
  0x23   :  { %273 = vmatpush3.bf16.msra.mxu0 %v304_v9 }
  0x24   :  { %274 = vmatprep.subr.bf16.mxu0 %v362_v2 }
  0x27   :  { %275 = vmatpush3.bf16.msra.mxu0 %v305_v10 }
  0x28   :  { %276 = vmatprep.subr.bf16.mxu0 %v362_v2 }
  0x2b   :  { %277 = vmatpush3.bf16.msra.mxu0 %v306_v11 }
  0x2c   :  { %278 = vmatprep.subr.bf16.mxu0 %v362_v2 }
  0x2f   :  { %279 = vmatpush3.bf16.msra.mxu0 %v307_v12 }
  0x30   :  { %280 = vmatprep.subr.bf16.mxu0 %v362_v2 }
  0x33   :  { %281 = vmatpush3.bf16.msra.mxu0 %v308_v13 }
  0x94   :  { %v49_v20 = vpop.permute.xlu0 %48 }
  0x95   :  { %v68_v22 = vpop.permute.xlu1 %67  ;;  %v55_v30 = vmul.f32 %v54_v24, %v49_v20 }
  0x96   :  { %v74_v32 = vmul.f32 %v73_v26, %v68_v22 }
  0x99   :  { %v58_v28 = vpop.permute.xlu0 %57 }
  0x9a   :  { %v78_v29 = vpop.permute.xlu1 %77  ;;  %v64_v31 = vmul.f32 %v63_v25, %v58_v28 }
  0x9b   :  { %v84_v34 = vmul.f32 %v83_v27, %v78_v29 }
  0x9c   :  { %v65_v33 = vadd.f32 %v64_v31, %v55_v30 }
  0x9e   :  { %v75_v35 = vadd.f32 %v74_v32, %v65_v33 }
  0xa0   :  { %v85_v37 = vadd.f32 %v84_v34, %v75_v35 }
  0xa2   :  { %v93_v38 = vadd.f32 %v246_v36, %v85_v37 }
  0xa4   :  { %v94_v39 = vmax.f32 %v93_v38, 0.0 }
  0xa6   :  { %v95_v40 = vpack.c.bf16 %v94_v39, %v94_v39 }
  0xa8   :  { %283 = vmatmul.mubr.bf16.vlgmr.msra.gmra.mrb[0].mxu0 %v95_v40 }
 0x17b   :  { %v201_v42 = vpop.f32.mrb[0].mxu0 }
 0x17c   :  { %v202_v43 = vadd.f32 %v247_v41, %v201_v42  ;;  %v284_v44 = vpop.f32.mrb[1].mxu0 }
 0x17d   :  { %v204_v45 = vpop.f32.mrb[2].mxu0 }
 0x17e   :  { %v207_v47 = vmax.f32 %v202_v43, 0.0  ;;  %v285_v48 = vpop.f32.mrb[3].mxu0 }
 0x180   :  { %v215_v49 = vmul.f32 %v256_v46, %v207_v47 }
 0x182   :  { %216 = vadd.xlane.f32.xlu1 %v215_v49 }
 0x20f   :  { %v217_v53 = vpop.xlane.xlu1 %216 }
 0x210   :  { %v220_v54 = vadd.f32 %v219_v51, %v217_v53 }
 0x212   :  { %v227_v55 = vrot.slane %v220_v54, %v226_v52 }
 0x214   :  { %230 = vst.msk [vmem:[#allocation6] sm:$0x1] %vm229_vm1, %v227_v55 }
 0x215   :  { %342 = shalt.err (!%p339_p12)
}
 0x216   :  { %s343_s6 = scalar_lea.hbm %s456_s7, 16 }
 0x217   :  { %p344_p13 = scmp.ne.s32.totalorder %s456_s7, %s343_s6  ;;  %p347_p0 = scmp.lt.u32.totalorder %s343_s6, %s456_s7 }
 0x219   :  { %p349_p1 = pnand %p347_p0, %p344_p13 }
 0x21b   :  { %352 = shalt.err (!%p349_p1)
}
 0x21c   :  { %240 = dma.vmem_to_hbm [thread:$0]  %s238_s23, 16, %s456_s7, [#allocation5]  }
 0x21d   :  { %355 = dma.done.wait [#allocation5], 16  }
 0x21e   :  { %356 = vsyncadd [#allocation5], 4294967280 }
 0x21f   :  { %244 = vsyncpa [#allocation4], 1 }
 0x220   :  { %245 = vsyncpa [#allocation5], 1 }

// kernel: tpu_custom_call.1
= control target key start
LH: loop header
LB: loop body
LE: loop exit
PB: predicated region body
PF: predicated region fallthrough
CT: control target
= control target key end

     0   :  { %13 = vsyncpa [#allocation4], 0  ;;  %s449_s0 = inlined_call_operand.vmem [shape: f32[8,4], index: 0, kind: input, shape index: {}]   ;;  %s450_s1 = inlined_call_operand.vmem [shape: bf16[4,128], index: 1, kind: input, shape index: {}]   ;;  %s451_s2 = inlined_call_operand.vmem [shape: f32[1,128], index: 2, kind: input, shape index: {}]   ;;  %s452_s3 = inlined_call_operand.hbm [shape: bf16[128,128], index: 3, kind: input, shape index: {}]   ;;  %s453_s4 = inlined_call_operand.vmem [shape: f32[1,128], index: 4, kind: input, shape index: {}]   ;;  %s454_s5 = inlined_call_operand.vmem [shape: f32[1,128], index: 5, kind: input, shape index: {}]   ;;  %s455_s6 = inlined_call_operand.<no memory space> [shape: f32[1], index: 6, kind: input, shape index: {}]   ;;  %s456_s7 = inlined_call_operand.hbm [shape: f32[1,8], index: 7, kind: output, shape index: {}]  }
   0x1   :  { %14 = vsyncpa [#allocation5], 0  ;;  %s357_s24 = smov [#allocation3]   ;;  %s309_s28 = scalar_lea.hbm %s452_s3, 1024 }
   0x2   :  { %s26_s25 = sshll.u32 %s357_s24, 4  ;;  %p310_p0 = scmp.ne.s32.totalorder %s452_s3, %s309_s28  ;;  %s27_s25 = int_to_ptr.vmem [resolvable:$true] %s26_s25 }
   0x3   :  { %p313_p1 = scmp.lt.u32.totalorder %s309_s28, %s452_s3 }
   0x5   :  { %p315_p2 = pnand %p313_p1, %p310_p0 }
   0x7   :  { %318 = shalt.err (!%p315_p2)
}
   0x8   :  { %s319_s10 = scalar_lea.vmem %s27_s25, 1024  ;;  %p324_p4 = scmp.lt.s32.totalorder %s27_s25, %s27_s25 }
   0x9   :  { %p320_p3 = scmp.ne.s32.totalorder %s27_s25, %s319_s10  ;;  %p325_p5 = scmp.lt.s32.totalorder %s319_s10, %s319_s10 }
   0xb   :  { %p326_p6 = por %p325_p5, %p324_p4 }
   0xd   :  { %p327_p7 = pnand %p326_p6, %p320_p3 }
   0xf   :  { %330 = shalt.err (!%p327_p7)
}
  0x10   :  { %s358_s11 = smov 64   ;;  %s359_s12 = smov 4  }
  0x11   :  { %32 = dma.hbm_to_vmem [thread:$0]  %s452_s3, 1024, %s27_s25, [#allocation4], %s358_s11, %s358_s11, %s359_s12  }
  0x12   :  { %353 = dma.done.wait [#allocation4], 1024  }
  0x13   :  { %354 = vsyncadd [#allocation4], 4294966272  ;;  %v360_v0 = vmov 0   ;;  %v361_v1 = vmov 2   ;;  %v362_v2 = vmov 0.0   ;;  %v43_v3 = vld [vmem:[%s449_s0] sm:$0xff]  ;;  %v51_v14 = vlaneseq }
  0x14   :  { %296 = vset.pattern.permute.xlu0 %v360_v0  ;;  %298 = vset.pattern.permute.xlu1 %v361_v1  ;;  %v301_v4 = vld [vmem:[#allocation3] sm:$0xff]   ;;  %v302_v5 = vld [vmem:[#allocation3 + $0x8] sm:$0xff]   ;;  %v363_v6 = vmov 1   ;;  %v364_v7 = vmov 3   ;;  %v303_v8 = vld [vmem:[#allocation3 + $0x10] sm:$0xff]   ;;  %vm365_vm0 = vmmov 0   ;;  %v219_v51 = vstv %s455_s6 }
  0x15   :  { %266 = vmatprep.subr.bf16.mxu0 %v362_v2  ;;  %48 = vperm.xlu0 %296, %v43_v3   ;;  %v304_v9 = vld [vmem:[#allocation3 + $0x18] sm:$0xff]   ;;  %v305_v10 = vld [vmem:[#allocation3 + $0x20] sm:$0xff]   ;;  %v306_v11 = vld [vmem:[#allocation3 + $0x28] sm:$0xff]   ;;  %v52_v15 = vshrl.u32 %v51_v14, 7  ;;  %v223_v50 = vand.u32 127, %v51_v14  ;;  %vm229_vm1 = vcmask 57344  }
  0x16   :  { %67 = vperm.xlu1 %298, %v43_v3   ;;  %267 = vmatpush3.bf16.msra.mxu0 %v301_v4  ;;  %v307_v12 = vld [vmem:[#allocation3 + $0x30] sm:$0xff]   ;;  %v308_v13 = vld [vmem:[#allocation3 + $0x38] sm:$0xff]   ;;  %v44_v16 = vld [vmem:[%s450_s1] sm:$0x3] }
  0x17   :  { %268 = vmatprep.subr.bf16.mxu0 %v362_v2  ;;  %282 = vmatprep.mubr.msk.bf16.mxu0 %vm365_vm0, %v362_v2  ;;  %v45_v17 = vunpack.c.l.bf16 %v44_v16  ;;  %v53_v18 = vsub.s32 0, %v52_v15  ;;  %v62_v19 = vsub.s32 1, %v52_v15  ;;  %v72_v21 = vsub.s32 2, %v52_v15  ;;  %v246_v36 = vld [vmem:[%s451_s2] ss:$0 sm:$0xff] }
  0x18   :  { %v82_v23 = vsub.s32 3, %v52_v15  ;;  %v247_v41 = vld [vmem:[%s453_s4] ss:$0 sm:$0xff]  ;;  %v226_v52 = vsub.s32 %v223_v50, %v52_v15  ;;  %s366_s4 = smov [#allocation6]  }
  0x19   :  { %297 = vset.pattern.permute.xlu0 %v363_v6  ;;  %v54_v24 = vrot.slane %v45_v17, %v53_v18  ;;  %v63_v25 = vrot.slane %v45_v17, %v62_v19  ;;  %v73_v26 = vrot.slane %v45_v17, %v72_v21  ;;  %v256_v46 = vld [vmem:[%s454_s5] ss:$0 sm:$0xff]  ;;  %s237_s23 = sshll.u32 %s366_s4, 4  ;;  %s238_s23 = int_to_ptr.vmem [resolvable:$true] %s237_s23 }
  0x1a   :  { %299 = vset.pattern.permute.xlu1 %v364_v7  ;;  %57 = vperm.xlu0 %297, %v43_v3   ;;  %v83_v27 = vrot.slane %v45_v17, %v82_v23  ;;  %s331_s24 = scalar_lea.vmem %s238_s23, 16  ;;  %s335_s5 = scalar_lea.vmem %s238_s23, 32 }
  0x1b   :  { %77 = vperm.xlu1 %299, %v43_v3   ;;  %269 = vmatpush3.bf16.msra.mxu0 %v302_v5  ;;  %p332_p8 = scmp.ne.s32.totalorder %s238_s23, %s331_s24  ;;  %p336_p9 = scmp.lt.s32.totalorder %s238_s23, %s238_s23 }
  0x1c   :  { %270 = vmatprep.subr.bf16.mxu0 %v362_v2  ;;  %p337_p10 = scmp.lt.s32.totalorder %s335_s5, %s331_s24 }
  0x1e   :  { %300 = vset.pattern.permute.xlu0 %v364_v7  ;;  %p338_p11 = por %p337_p10, %p336_p9 }
  0x1f   :  { %271 = vmatpush3.bf16.msra.mxu0 %v303_v8 }
  0x20   :  { %272 = vmatprep.subr.bf16.mxu0 %v362_v2  ;;  %p339_p12 = pnand %p338_p11, %p332_p8 }
  0x23   :  { %273 = vmatpush3.bf16.msra.mxu0 %v304_v9 }
  0x24   :  { %274 = vmatprep.subr.bf16.mxu0 %v362_v2 }
  0x27   :  { %275 = vmatpush3.bf16.msra.mxu0 %v305_v10 }
  0x28   :  { %276 = vmatprep.subr.bf16.mxu0 %v362_v2 }
  0x2b   :  { %277 = vmatpush3.bf16.msra.mxu0 %v306_v11 }
  0x2c   :  { %278 = vmatprep.subr.bf16.mxu0 %v362_v2 }
  0x2f   :  { %279 = vmatpush3.bf16.msra.mxu0 %v307_v12 }
  0x30   :  { %280 = vmatprep.subr.bf16.mxu0 %v362_v2 }
  0x33   :  { %281 = vmatpush3.bf16.msra.mxu0 %v308_v13 }
  0x94   :  { %v49_v20 = vpop.permute.xlu0 %48 }
  0x95   :  { %v68_v22 = vpop.permute.xlu1 %67  ;;  %v55_v30 = vmul.f32 %v54_v24, %v49_v20 }
  0x96   :  { %v74_v32 = vmul.f32 %v73_v26, %v68_v22 }
  0x99   :  { %v58_v28 = vpop.permute.xlu0 %57 }
  0x9a   :  { %v78_v29 = vpop.permute.xlu1 %77  ;;  %v64_v31 = vmul.f32 %v63_v25, %v58_v28 }
  0x9b   :  { %v84_v34 = vmul.f32 %v83_v27, %v78_v29 }
  0x9c   :  { %v65_v33 = vadd.f32 %v64_v31, %v55_v30 }
  0x9e   :  { %v75_v35 = vadd.f32 %v74_v32, %v65_v33 }
  0xa0   :  { %v85_v37 = vadd.f32 %v84_v34, %v75_v35 }
  0xa2   :  { %v93_v38 = vadd.f32 %v246_v36, %v85_v37 }
  0xa4   :  { %v94_v39 = vmax.f32 %v93_v38, 0.0 }
  0xa6   :  { %v95_v40 = vpack.c.bf16 %v94_v39, %v94_v39 }
  0xa8   :  { %283 = vmatmul.mubr.bf16.vlgmr.msra.gmra.mrb[0].mxu0 %v95_v40 }
 0x17b   :  { %v201_v42 = vpop.f32.mrb[0].mxu0 }
 0x17c   :  { %v202_v43 = vadd.f32 %v247_v41, %v201_v42  ;;  %v284_v44 = vpop.f32.mrb[1].mxu0 }
 0x17d   :  { %v204_v45 = vpop.f32.mrb[2].mxu0 }
 0x17e   :  { %v207_v47 = vmax.f32 %v202_v43, 0.0  ;;  %v285_v48 = vpop.f32.mrb[3].mxu0 }
 0x180   :  { %v215_v49 = vmul.f32 %v256_v46, %v207_v47 }
 0x182   :  { %216 = vadd.xlane.f32.xlu1 %v215_v49 }
 0x20f   :  { %v217_v53 = vpop.xlane.xlu1 %216 }
 0x210   :  { %v220_v54 = vadd.f32 %v219_v51, %v217_v53 }
 0x212   :  { %v227_v55 = vrot.slane %v220_v54, %v226_v52 }
 0x214   :  { %230 = vst.msk [vmem:[#allocation6] sm:$0x1] %vm229_vm1, %v227_v55 }
 0x215   :  { %342 = shalt.err (!%p339_p12)
}
 0x216   :  { %s343_s6 = scalar_lea.hbm %s456_s7, 16 }
 0x217   :  { %p344_p13 = scmp.ne.s32.totalorder %s456_s7, %s343_s6  ;;  %p347_p0 = scmp.lt.u32.totalorder %s343_s6, %s456_s7 }
 0x219   :  { %p349_p1 = pnand %p347_p0, %p344_p13 }
 0x21b   :  { %352 = shalt.err (!%p349_p1)
}
 0x21c   :  { %240 = dma.vmem_to_hbm [thread:$0]  %s238_s23, 16, %s456_s7, [#allocation5]  }
 0x21d   :  { %355 = dma.done.wait [#allocation5], 16  }
 0x21e   :  { %356 = vsyncadd [#allocation5], 4294967280 }
 0x21f   :  { %244 = vsyncpa [#allocation4], 1 }
 0x220   :  { %245 = vsyncpa [#allocation5], 1 }

</bundles_post_ra>
